<compile_context>
chip_gen: v5e
topology: v5e:2x2
jax: 0.10.0
libtpu: 0.0.40
codegen_flags: <defaults>
</compile_context>

<pallas_src>
import jax
import jax.numpy as jnp
from jax.experimental import pallas as pl
from jax.experimental.pallas import tpu as pltpu

IN_NOISE = 100
IN_LABEL = 10
IN_DIM = IN_NOISE + IN_LABEL   # 110
HID_DIM = 200                  # true LayerNorm width
HID_PAD = 256                  # lane/MXU-aligned hidden width (zero padded)
OUT_DIM = 784
LN_EPS = 1e-5
LEAKY_SLOPE = 0.02
TILE_B = 1024                  # max batch rows per grid step
MIN_GRID_STEPS = 4             # aim for >=4 steps so v7x's 2 TCs both get work


def _generator_kernel(noise_ref, label_ref, w1a_ref, w1b_ref, b1_ref, w2_ref, b2_ref, o_ref):
    # noise: [tb, 100] bf16, label: [tb, 10] bf16
    # w1a: [100, 256] bf16, w1b: [10, 256] bf16, b1: [1, 256] f32
    # w2:  [256, 784] bf16 (LN affine folded in, padded hidden rows are zero), b2: [1, 784] f32
    noise = noise_ref[...]
    label = label_ref[...]

    # Linear(110 -> 200) over the (noise, label) concat, without materializing the concat.
    h = jnp.dot(noise, w1a_ref[...], preferred_element_type=jnp.float32)
    h = h + jnp.dot(label, w1b_ref[...], preferred_element_type=jnp.float32)
    h = h + b1_ref[...]

    # LeakyReLU(0.02).  Padded hidden columns stay exactly zero (weight/bias padding is zero).
    h = jnp.where(h > 0, h, LEAKY_SLOPE * h)

    # LayerNorm(200): one-pass moments with an explicit divisor (zero padding lanes contribute
    # nothing to the sums); biased variance, clamped at 0 against f32 cancellation.
    s = jnp.sum(h, axis=-1, keepdims=True)
    ss = jnp.sum(h * h, axis=-1, keepdims=True)
    mean = s * (1.0 / HID_DIM)
    var = jnp.maximum(ss * (1.0 / HID_DIM) - mean * mean, 0.0)
    h_norm = (h - mean) * jax.lax.rsqrt(var + LN_EPS)
    # gamma/beta are folded into w2/b2 offline; padded rows of w2 are zero so the nonzero
    # normalized values in padded columns contribute nothing to the output.

    # Linear(200 -> 784) + Sigmoid.  sigmoid(y) == 0.5*tanh(0.5*y) + 0.5: single EUP op,
    # computed in f32 (v5e-safe), stored as bf16.
    y = jnp.dot(h_norm.astype(jnp.bfloat16), w2_ref[...], preferred_element_type=jnp.float32)
    y = y + b2_ref[...]
    o_ref[...] = (0.5 * jnp.tanh(0.5 * y) + 0.5).astype(o_ref.dtype)


def prepare_params(params):
    """Fold LayerNorm affine into Linear2, pad hidden dim 200->256, cast weights to bf16."""
    w1, b1 = params["w1"], params["b1"]            # [110,200], [1,200]
    gamma, beta = params["gamma"], params["beta"]  # [1,200]
    w2, b2 = params["w2"], params["b2"]            # [200,784], [1,784]

    # (h*gamma + beta) @ w2 + b2 == h @ (gamma.T * w2) + (beta @ w2 + b2)
    w2f = gamma.reshape(-1, 1) * w2                # [200, 784]
    b2f = beta @ w2 + b2                           # [1, 784]

    pad_h = HID_PAD - HID_DIM
    w1p = jnp.pad(w1, ((0, 0), (0, pad_h)))        # [110, 256]
    b1p = jnp.pad(b1, ((0, 0), (0, pad_h)))        # [1, 256]
    w2p = jnp.pad(w2f, ((0, pad_h), (0, 0)))       # [256, 784]

    return {
        "w1a": w1p[:IN_NOISE].astype(jnp.bfloat16),   # [100, 256]
        "w1b": w1p[IN_NOISE:].astype(jnp.bfloat16),   # [10, 256]
        "b1": b1p.astype(jnp.float32),                # [1, 256]
        "w2": w2p.astype(jnp.bfloat16),               # [256, 784]
        "b2": b2f.astype(jnp.float32),                # [1, 784]
    }


def _round_up(x, m):
    return (x + m - 1) // m * m


def _pick_tile_b(B):
    """Batch tile: full array for tiny batches; otherwise 8-aligned, >=MIN_GRID_STEPS grid steps
    (so both v7x TensorCores get work and the pipeline has something to overlap), capped at
    TILE_B so per-step overhead stays <10% while VMEM use stays tiny (~4.5 MiB at 1024/bf16)."""
    if B <= 8:
        return B
    tile = min(TILE_B, _round_up(pl.cdiv(B, MIN_GRID_STEPS), 8))
    return max(tile, 8)


def generator_forward(image_tensor, label_tensor, kparams):
    """image_tensor (noise): [B, 100], label_tensor: [B, 10] -> [B, 784] (bfloat16).

    Inputs are cast to bf16 at the call boundary; pass them in bf16 to avoid any wrapper cast.
    """
    B = image_tensor.shape[0]
    tile_b = _pick_tile_b(B)
    grid = (pl.cdiv(B, tile_b),)

    batch_map = lambda i: (i, 0)
    const_map = lambda i: (0, 0)     # weights: same block every step -> stay VMEM-resident

    return pl.pallas_call(
        _generator_kernel,
        out_shape=jax.ShapeDtypeStruct((B, OUT_DIM), jnp.bfloat16),
        grid_spec=pltpu.PrefetchScalarGridSpec(
            num_scalar_prefetch=0,
            grid=grid,
            in_specs=[
                pl.BlockSpec((tile_b, IN_NOISE), batch_map),
                pl.BlockSpec((tile_b, IN_LABEL), batch_map),
                pl.BlockSpec((IN_NOISE, HID_PAD), const_map),
                pl.BlockSpec((IN_LABEL, HID_PAD), const_map),
                pl.BlockSpec((1, HID_PAD), const_map),
                pl.BlockSpec((HID_PAD, OUT_DIM), const_map),
                pl.BlockSpec((1, OUT_DIM), const_map),
            ],
            out_specs=pl.BlockSpec((tile_b, OUT_DIM), batch_map),
        ),
        compiler_params=pltpu.CompilerParams(
            dimension_semantics=("parallel",)),   # batch axis -> megacore sharding on v7x
    )(
        image_tensor.astype(jnp.bfloat16), label_tensor.astype(jnp.bfloat16),
        kparams["w1a"], kparams["w1b"], kparams["b1"], kparams["w2"], kparams["b2"],
    )


def init_params(key):
    """nn.Linear-style init (U(-1/sqrt(fan_in), 1/sqrt(fan_in))).  LN affine is randomized
    (instead of PyTorch's ones/zeros default) so the fold-into-Linear2 path is exercised."""
    k1, k2, k3, k4, k5, k6 = jax.random.split(key, 6)
    bound1 = 1.0 / jnp.sqrt(IN_DIM)
    bound2 = 1.0 / jnp.sqrt(HID_DIM)
    return {
        "w1": jax.random.uniform(k1, (IN_DIM, HID_DIM), jnp.float32, -bound1, bound1),
        "b1": jax.random.uniform(k2, (1, HID_DIM), jnp.float32, -bound1, bound1),
        "gamma": 1.0 + 0.1 * jax.random.normal(k5, (1, HID_DIM), jnp.float32),
        "beta": 0.1 * jax.random.normal(k6, (1, HID_DIM), jnp.float32),
        "w2": jax.random.uniform(k3, (HID_DIM, OUT_DIM), jnp.float32, -bound2, bound2),
        "b2": jax.random.uniform(k4, (1, OUT_DIM), jnp.float32, -bound2, bound2),
    }


def _reference_forward(image_tensor, label_tensor, params):
    """Pure-JAX f32 reference matching the PyTorch module semantics."""
    x = jnp.concatenate([image_tensor, label_tensor], axis=-1).astype(jnp.float32)
    h = x @ params["w1"] + params["b1"]
    h = jnp.where(h > 0, h, LEAKY_SLOPE * h)
    mean = jnp.mean(h, axis=-1, keepdims=True)
    var = jnp.mean((h - mean) ** 2, axis=-1, keepdims=True)
    h = (h - mean) / jnp.sqrt(var + LN_EPS)
    h = h * params["gamma"] + params["beta"]
    y = h @ params["w2"] + params["b2"]
    return jax.nn.sigmoid(y)


# TODO(synk): train()/Adam/progress bookkeeping from the PyTorch module is training machinery,
# not part of the forward pass, and is not implemented here.

if __name__ == "__main__":
    key = jax.random.PRNGKey(0)
    kp, kn, kl, kn2, kl2 = jax.random.split(key, 5)

    params = init_params(kp)
    kparams = prepare_params(params)

    # Small batch (single grid step, full-array batch block).  Inputs generated directly in bf16
    # so no wrapper-side cast pass is added.
    B = 2
    image_tensor = jax.random.normal(kn, (B, IN_NOISE), jnp.bfloat16)           # noise seeds
    labels = jax.random.randint(kl, (B,), 0, 10)
    label_tensor = jax.nn.one_hot(labels, IN_LABEL, dtype=jnp.bfloat16)

    out = jax.block_until_ready(generator_forward(image_tensor, label_tensor, kparams))
    ref = _reference_forward(image_tensor, label_tensor, params)
    assert out.shape == (B, OUT_DIM), out.shape
    assert out.dtype == jnp.bfloat16, out.dtype
    # bf16 MXU weights + bf16 output rounding -> looser tolerance than a pure-f32 check.
    err = float(jnp.max(jnp.abs(out.astype(jnp.float32) - ref)))
    assert err < 2.5e-2, err

    # Larger batch: exercises the multi-step batch grid including a ragged last tile.
    B2 = 300
    img2 = jax.random.normal(kn2, (B2, IN_NOISE), jnp.bfloat16)
    lab2 = jax.nn.one_hot(jax.random.randint(kl2, (B2,), 0, 10), IN_LABEL, dtype=jnp.bfloat16)
    out2 = jax.block_until_ready(generator_forward(img2, lab2, kparams))
    ref2 = _reference_forward(img2, lab2, params)
    assert out2.shape == (B2, OUT_DIM), out2.shape
    err2 = float(jnp.max(jnp.abs(out2.astype(jnp.float32) - ref2)))
    assert err2 < 2.5e-2, err2

    print("KERNEL_OK")
</pallas_src>

<mosaic_0001>
module attributes {stable_mosaic.version = 11 : i64} {
  func.func @_generator_kernel(%arg0: i32, %arg1: memref<2x100xbf16, #tpu.memory_space<vmem>>, %arg2: memref<2x10xbf16, #tpu.memory_space<vmem>>, %arg3: memref<100x256xbf16, #tpu.memory_space<vmem>>, %arg4: memref<10x256xbf16, #tpu.memory_space<vmem>>, %arg5: memref<1x256xf32, #tpu.memory_space<vmem>>, %arg6: memref<256x784xbf16, #tpu.memory_space<vmem>>, %arg7: memref<1x784xf32, #tpu.memory_space<vmem>>, %arg8: memref<2x784xbf16, #tpu.memory_space<vmem>>) attributes {dimension_semantics = [#tpu.dimension_semantics<parallel>], iteration_bounds = array<i64: 1>, scalar_prefetch = 0 : i64, scratch_operands = 0 : i64, tpu.core_type = #tpu.core_type<tc>, window_params = [{transform_indices = @transform_0, window_bounds = array<i64: 2, 100>}, {transform_indices = @transform_1, window_bounds = array<i64: 2, 10>}, {pipeline_mode = #tpu.pipeline_mode<synchronous>, transform_indices = @transform_2, window_bounds = array<i64: 100, 256>}, {pipeline_mode = #tpu.pipeline_mode<synchronous>, transform_indices = @transform_3, window_bounds = array<i64: 10, 256>}, {pipeline_mode = #tpu.pipeline_mode<synchronous>, transform_indices = @transform_4, window_bounds = array<i64: 1, 256>}, {pipeline_mode = #tpu.pipeline_mode<synchronous>, transform_indices = @transform_5, window_bounds = array<i64: 256, 784>}, {pipeline_mode = #tpu.pipeline_mode<synchronous>, transform_indices = @transform_6, window_bounds = array<i64: 1, 784>}, {transform_indices = @transform_7, window_bounds = array<i64: 2, 784>}]} {
    %c0 = arith.constant 0 : index
    %c0_0 = arith.constant 0 : index
    %0 = vector.load %arg1[%c0, %c0_0] : memref<2x100xbf16, #tpu.memory_space<vmem>>, vector<2x100xbf16>
    %c0_1 = arith.constant 0 : index
    %c0_2 = arith.constant 0 : index
    %1 = vector.load %arg2[%c0_1, %c0_2] : memref<2x10xbf16, #tpu.memory_space<vmem>>, vector<2x10xbf16>
    %c0_3 = arith.constant 0 : index
    %c0_4 = arith.constant 0 : index
    %2 = vector.load %arg3[%c0_3, %c0_4] : memref<100x256xbf16, #tpu.memory_space<vmem>>, vector<100x256xbf16>
    %cst = arith.constant dense<0.000000e+00> : vector<2x256xf32>
    %3 = tpu.matmul %0, %2, %cst {dimension_numbers = #tpu.dot_dimension_numbers<[1], [0], [0], [1], [0, 0, 1, 1], [], []>} : vector<2x100xbf16>, vector<100x256xbf16>, vector<2x256xf32> -> vector<2x256xf32>
    %c0_5 = arith.constant 0 : index
    %c0_6 = arith.constant 0 : index
    %4 = vector.load %arg4[%c0_5, %c0_6] : memref<10x256xbf16, #tpu.memory_space<vmem>>, vector<10x256xbf16>
    %cst_7 = arith.constant dense<0.000000e+00> : vector<2x256xf32>
    %5 = tpu.matmul %1, %4, %cst_7 {dimension_numbers = #tpu.dot_dimension_numbers<[1], [0], [0], [1], [0, 0, 1, 1], [], []>} : vector<2x10xbf16>, vector<10x256xbf16>, vector<2x256xf32> -> vector<2x256xf32>
    %6 = arith.addf %3, %5 : vector<2x256xf32>
    %c0_8 = arith.constant 0 : index
    %c0_9 = arith.constant 0 : index
    %7 = vector.load %arg5[%c0_8, %c0_9] : memref<1x256xf32, #tpu.memory_space<vmem>>, vector<1x256xf32>
    %8 = vector.broadcast %7 : vector<1x256xf32> to vector<2x256xf32>
    %9 = arith.addf %6, %8 : vector<2x256xf32>
    %cst_10 = arith.constant 0.000000e+00 : f32
    %10 = vector.broadcast %cst_10 : f32 to vector<2x256xf32>
    %11 = arith.cmpf ogt, %9, %10 : vector<2x256xf32>
    %cst_11 = arith.constant 2.000000e-02 : f32
    %12 = vector.broadcast %cst_11 : f32 to vector<2x256xf32>
    %13 = arith.mulf %12, %9 : vector<2x256xf32>
    %14 = arith.select %11, %9, %13 : vector<2x256xi1>, vector<2x256xf32>
    %cst_12 = arith.constant dense<0.000000e+00> : vector<2xf32>
    %15 = vector.multi_reduction <add>, %14, %cst_12 [1] : vector<2x256xf32> to vector<2xf32>
    %16 = vector.shape_cast %15 : vector<2xf32> to vector<2x1xf32>
    %17 = arith.mulf %14, %14 : vector<2x256xf32>
    %cst_13 = arith.constant dense<0.000000e+00> : vector<2xf32>
    %18 = vector.multi_reduction <add>, %17, %cst_13 [1] : vector<2x256xf32> to vector<2xf32>
    %19 = vector.shape_cast %18 : vector<2xf32> to vector<2x1xf32>
    %cst_14 = arith.constant 5.000000e-03 : f32
    %20 = vector.broadcast %cst_14 : f32 to vector<2x1xf32>
    %21 = arith.mulf %16, %20 : vector<2x1xf32>
    %cst_15 = arith.constant 5.000000e-03 : f32
    %22 = vector.broadcast %cst_15 : f32 to vector<2x1xf32>
    %23 = arith.mulf %19, %22 : vector<2x1xf32>
    %24 = arith.mulf %21, %21 : vector<2x1xf32>
    %25 = arith.subf %23, %24 : vector<2x1xf32>
    %cst_16 = arith.constant 0.000000e+00 : f32
    %26 = vector.broadcast %cst_16 : f32 to vector<2x1xf32>
    %27 = arith.maximumf %25, %26 : vector<2x1xf32>
    %28 = vector.broadcast %21 : vector<2x1xf32> to vector<2x256xf32>
    %29 = arith.subf %14, %28 : vector<2x256xf32>
    %cst_17 = arith.constant 9.99999974E-6 : f32
    %30 = vector.broadcast %cst_17 : f32 to vector<2x1xf32>
    %31 = arith.addf %27, %30 : vector<2x1xf32>
    %32 = math.rsqrt %31 : vector<2x1xf32>
    %33 = vector.broadcast %32 : vector<2x1xf32> to vector<2x256xf32>
    %34 = arith.mulf %29, %33 : vector<2x256xf32>
    %35 = arith.truncf %34 : vector<2x256xf32> to vector<2x256xbf16>
    %c0_18 = arith.constant 0 : index
    %c0_19 = arith.constant 0 : index
    %36 = vector.load %arg6[%c0_18, %c0_19] : memref<256x784xbf16, #tpu.memory_space<vmem>>, vector<256x784xbf16>
    %cst_20 = arith.constant dense<0.000000e+00> : vector<2x784xf32>
    %37 = tpu.matmul %35, %36, %cst_20 {dimension_numbers = #tpu.dot_dimension_numbers<[1], [0], [0], [1], [0, 0, 1, 1], [], []>} : vector<2x256xbf16>, vector<256x784xbf16>, vector<2x784xf32> -> vector<2x784xf32>
    %c0_21 = arith.constant 0 : index
    %c0_22 = arith.constant 0 : index
    %38 = vector.load %arg7[%c0_21, %c0_22] : memref<1x784xf32, #tpu.memory_space<vmem>>, vector<1x784xf32>
    %39 = vector.broadcast %38 : vector<1x784xf32> to vector<2x784xf32>
    %40 = arith.addf %37, %39 : vector<2x784xf32>
    %cst_23 = arith.constant 5.000000e-01 : f32
    %41 = vector.broadcast %cst_23 : f32 to vector<2x784xf32>
    %42 = arith.mulf %41, %40 : vector<2x784xf32>
    %43 = math.tanh %42 : vector<2x784xf32>
    %cst_24 = arith.constant 5.000000e-01 : f32
    %44 = vector.broadcast %cst_24 : f32 to vector<2x784xf32>
    %45 = arith.mulf %44, %43 : vector<2x784xf32>
    %cst_25 = arith.constant 5.000000e-01 : f32
    %46 = vector.broadcast %cst_25 : f32 to vector<2x784xf32>
    %47 = arith.addf %45, %46 : vector<2x784xf32>
    %48 = arith.truncf %47 : vector<2x784xf32> to vector<2x784xbf16>
    %c0_26 = arith.constant 0 : index
    %c0_27 = arith.constant 0 : index
    %49 = vector.load %arg8[%c0_26, %c0_27] : memref<2x784xbf16, #tpu.memory_space<vmem>>, vector<2x784xbf16>
    tpu.vector_store %arg8[%c0_26, %c0_27], %48 {strides = array<i32>} : memref<2x784xbf16, #tpu.memory_space<vmem>>, vector<2x784xbf16>,
    return
  }
  func.func @transform_0(%arg0: i32) -> (i32, i32) {
    %c0_i32 = arith.constant 0 : i32
    %c0_i32_0 = arith.constant 0 : i32
    return %arg0, %c0_i32 : i32, i32
  }
  func.func @transform_1(%arg0: i32) -> (i32, i32) {
    %c0_i32 = arith.constant 0 : i32
    %c0_i32_0 = arith.constant 0 : i32
    return %arg0, %c0_i32 : i32, i32
  }
  func.func @transform_2(%arg0: i32) -> (i32, i32) {
    %c0_i32 = arith.constant 0 : i32
    %c0_i32_0 = arith.constant 0 : i32
    %c0_i32_1 = arith.constant 0 : i32
    return %c0_i32, %c0_i32_0 : i32, i32
  }
  func.func @transform_3(%arg0: i32) -> (i32, i32) {
    %c0_i32 = arith.constant 0 : i32
    %c0_i32_0 = arith.constant 0 : i32
    %c0_i32_1 = arith.constant 0 : i32
    return %c0_i32, %c0_i32_0 : i32, i32
  }
  func.func @transform_4(%arg0: i32) -> (i32, i32) {
    %c0_i32 = arith.constant 0 : i32
    %c0_i32_0 = arith.constant 0 : i32
    %c0_i32_1 = arith.constant 0 : i32
    return %c0_i32, %c0_i32_0 : i32, i32
  }
  func.func @transform_5(%arg0: i32) -> (i32, i32) {
    %c0_i32 = arith.constant 0 : i32
    %c0_i32_0 = arith.constant 0 : i32
    %c0_i32_1 = arith.constant 0 : i32
    return %c0_i32, %c0_i32_0 : i32, i32
  }
  func.func @transform_6(%arg0: i32) -> (i32, i32) {
    %c0_i32 = arith.constant 0 : i32
    %c0_i32_0 = arith.constant 0 : i32
    %c0_i32_1 = arith.constant 0 : i32
    return %c0_i32, %c0_i32_0 : i32, i32
  }
  func.func @transform_7(%arg0: i32) -> (i32, i32) {
    %c0_i32 = arith.constant 0 : i32
    %c0_i32_0 = arith.constant 0 : i32
    return %arg0, %c0_i32 : i32, i32
  }
}

</mosaic_0001>

<bundles_post_ra>
// kernel: tpu_custom_call.1
= control target key start
LH: loop header
LB: loop body
LE: loop exit
PB: predicated region body
PF: predicated region fallthrough
CT: control target
= control target key end

     0   :  { %vm57_vm0 = vcmask 1044480   ;;  %vm159_vm1 = vcmask 1041408   ;;  %vm53_vm2 = vcmask 80896   ;;  %s2775_s0 = inlined_call_operand.vmem [shape: bf16[2,100], index: 0, kind: input, shape index: {}]   ;;  %s2776_s1 = inlined_call_operand.vmem [shape: bf16[2,10], index: 1, kind: input, shape index: {}]   ;;  %s2777_s2 = inlined_call_operand.vmem [shape: bf16[100,256], index: 2, kind: input, shape index: {}]   ;;  %s2778_s3 = inlined_call_operand.vmem [shape: bf16[10,256], index: 3, kind: input, shape index: {}]   ;;  %s2779_s4 = inlined_call_operand.vmem [shape: f32[1,256], index: 4, kind: input, shape index: {}]   ;;  %s2780_s5 = inlined_call_operand.vmem [shape: bf16[256,784], index: 5, kind: input, shape index: {}]   ;;  %s2781_s6 = inlined_call_operand.vmem [shape: f32[1,784], index: 6, kind: input, shape index: {}]   ;;  %s2782_s7 = inlined_call_operand.hbm [shape: bf16[2,784], index: 7, kind: output, shape index: {}]  }
   0x1   :  { %v1236_v0 = vld [vmem:[%s2778_s3] sm:$0xf]  ;;  %v1755_v1 = vld [vmem:[%s2778_s3 + $0x4] sm:$0x10]  ;;  %v1754_v3 = vld [vmem:[%s2778_s3 + $0x4] sm:$0xf] }
   0x2   :  { %v1237_v2 = vor.u32 %v1755_v1, %v1236_v0  ;;  %v1238_v4 = vld [vmem:[%s2778_s3 + $0x8] sm:$0x10]  ;;  %v42_v5 = vld [vmem:[%s2777_s2 + $0x60] sm:$0x33]  ;;  %v1286_v10 = vld [vmem:[%s2777_s2 + $0x50] sm:$0xf] }
   0x3   :  { %v1241_v6 = vor.u32 %v1754_v3, %v1238_v4  ;;  %v127_v7 = vunpack.c.l.b16 %v42_v5  ;;  %v128_v8 = vunpack.c.h.b16 %v42_v5  ;;  %v1753_v11 = vld [vmem:[%s2777_s2 + $0x54] sm:$0xf0]  ;;  %v1752_v15 = vld [vmem:[%s2777_s2 + $0x54] sm:$0xf]  ;;  %v1288_v16 = vld [vmem:[%s2777_s2 + $0x58] sm:$0xf0] }
   0x4   :  { %v59_v9 = vsel %vm57_vm0, %v1237_v2, 0  ;;  %v29_v17 = vld [vmem:[%s2776_s1] sm:$0x1]  ;;  %v1287_v20 = vor.u32 %v1753_v11, %v1286_v10  ;;  %v1291_v21 = vor.u32 %v1752_v15, %v1288_v16  ;;  %v1751_v23 = vld [vmem:[%s2777_s2 + $0x44] sm:$0xf0] }
   0x5   :  { %71 = vmatpush.bf16.msra.mxu2 %v59_v9  ;;  %v62_v12 = vsel %vm57_vm0, %v1241_v6, 0  ;;  %v141_v13 = vpack.c.b16 %v127_v7, %v127_v7  ;;  %v142_v14 = vpack.c.b16 %v128_v8, %v128_v8  ;;  %v1278_v22 = vld [vmem:[%s2777_s2 + $0x40] sm:$0xf]  ;;  %v1750_v24 = vld [vmem:[%s2777_s2 + $0x44] sm:$0xf] }
   0x6   :  { %84 = vmatpush.bf16.msra.mxu3 %v62_v12  ;;  %v1280_v25 = vld [vmem:[%s2777_s2 + $0x48] sm:$0xf0]  ;;  %v1279_v26 = vor.u32 %v1751_v23, %v1278_v22  ;;  %v1270_v28 = vld [vmem:[%s2777_s2 + $0x30] sm:$0xf]  ;;  %v1749_v29 = vld [vmem:[%s2777_s2 + $0x34] sm:$0xf0] }
   0x7   :  { %v161_v18 = vsel %vm159_vm1, %v141_v13, 0  ;;  %v164_v19 = vsel %vm159_vm1, %v142_v14, 0  ;;  %v1283_v27 = vor.u32 %v1750_v24, %v1280_v25  ;;  %v1748_v30 = vld [vmem:[%s2777_s2 + $0x34] sm:$0xf]  ;;  %v1272_v31 = vld [vmem:[%s2777_s2 + $0x38] sm:$0xf0] }
   0x8   :  { %1242 = vmatmul.msk.bf16.vlgmr.msra.gmra.mxu2 %vm53_vm2, %v29_v17 }
   0x9   :  { %167 = vmatpush.bf16.msrb.mxu2 %v161_v18  ;;  %1243 = vmatmul.msk.bf16.vlgmr.msra.gmra.mxu3 %vm53_vm2, %v29_v17 }
   0xa   :  { %180 = vmatpush.bf16.msrb.mxu3 %v164_v19 }
   0xd   :  { %168 = vmatpush.bf16.msrb.mxu2 %v1287_v20 }
   0xe   :  { %181 = vmatpush.bf16.msrb.mxu3 %v1291_v21 }
   0xf   :  { %12 = vsyncpa [#allocation3], 0  ;;  %v1271_v32 = vor.u32 %v1749_v29, %v1270_v28  ;;  %v1275_v33 = vor.u32 %v1748_v30, %v1272_v31  ;;  %v1262_v34 = vld [vmem:[%s2777_s2 + $0x20] sm:$0xf]  ;;  %v1747_v35 = vld [vmem:[%s2777_s2 + $0x24] sm:$0xf0] }
  0x10   :  { %v1746_v36 = vld [vmem:[%s2777_s2 + $0x24] sm:$0xf]  ;;  %v1264_v37 = vld [vmem:[%s2777_s2 + $0x28] sm:$0xf0]  ;;  %v1263_v38 = vor.u32 %v1747_v35, %v1262_v34  ;;  %v1254_v40 = vld [vmem:[%s2777_s2 + $0x10] sm:$0xf] }
  0x11   :  { %169 = vmatpush.bf16.msrb.mxu2 %v1279_v26  ;;  %v1267_v39 = vor.u32 %v1746_v36, %v1264_v37  ;;  %v1745_v41 = vld [vmem:[%s2777_s2 + $0x14] sm:$0xf0]  ;;  %v1744_v42 = vld [vmem:[%s2777_s2 + $0x14] sm:$0xf]  ;;  %v1256_v43 = vld [vmem:[%s2777_s2 + $0x18] sm:$0xf0] }
  0x12   :  { %182 = vmatpush.bf16.msrb.mxu3 %v1283_v27  ;;  %v1255_v44 = vor.u32 %v1745_v41, %v1254_v40  ;;  %v1259_v45 = vor.u32 %v1744_v42, %v1256_v43  ;;  %v1246_v46 = vld [vmem:[%s2777_s2] sm:$0xf]  ;;  %v1743_v47 = vld [vmem:[%s2777_s2 + $0x4] sm:$0xf0]  ;;  %v1742_v48 = vld [vmem:[%s2777_s2 + $0x4] sm:$0xf] }
  0x13   :  { %v1248_v49 = vld [vmem:[%s2777_s2 + $0x8] sm:$0xf0]  ;;  %v1247_v50 = vor.u32 %v1743_v47, %v1246_v46  ;;  %v28_v52 = vld [vmem:[%s2775_s0] sm:$0x1]  ;;  %vm155_vm3 = vcmask 818176   ;;  %vm1207_vm9 = vcmask 1041409  }
  0x14   :  { %v1251_v51 = vor.u32 %v1742_v48, %v1248_v49  ;;  %v1492_v57 = vld [vmem:[%s2780_s5 + $0x188] sm:$0xf]  ;;  %v1808_v58 = vld [vmem:[%s2780_s5 + $0x1a0] sm:$0xf0]  ;;  %v1805_v62 = vld [vmem:[%s2780_s5 + $0x18c] sm:$0xf] }
  0x15   :  { %170 = vmatpush.bf16.msrb.mxu2 %v1271_v32  ;;  %v1716_v59 = vld [vmem:[%s2780_s5 + $0x348] sm:$0xf]  ;;  %v1493_v60 = vor.u32 %v1808_v58, %v1492_v57  ;;  %v1864_v61 = vld [vmem:[%s2780_s5 + $0x360] sm:$0xf0]  ;;  %v1861_v2 = vld [vmem:[%s2780_s5 + $0x34c] sm:$0xf] }
  0x16   :  { %183 = vmatpush.bf16.msrb.mxu3 %v1275_v33  ;;  %v1494_v63 = vld [vmem:[%s2780_s5 + $0x1a4] sm:$0xf0]  ;;  %v1717_v0 = vor.u32 %v1864_v61, %v1716_v59  ;;  %v1464_v4 = vld [vmem:[%s2780_s5 + $0x150] sm:$0xf]  ;;  %v1801_v6 = vld [vmem:[%s2780_s5 + $0x168] sm:$0xf0] }
  0x17   :  { %v1497_v1 = vor.u32 %v1805_v62, %v1494_v63  ;;  %v1718_v3 = vld [vmem:[%s2780_s5 + $0x364] sm:$0xf0]  ;;  %960 = vmatpush.bf16.msra.mxu0 %v1493_v60  ;;  %v1688_v7 = vld [vmem:[%s2780_s5 + $0x310] sm:$0xf]  ;;  %v1857_v8 = vld [vmem:[%s2780_s5 + $0x328] sm:$0xf0]  ;;  %v1465_v9 = vor.u32 %v1801_v6, %v1464_v4 }
  0x18   :  { %v1721_v5 = vor.u32 %v1861_v2, %v1718_v3  ;;  %973 = vmatpush.bf16.msra.mxu1 %v1717_v0  ;;  %v1689_v10 = vor.u32 %v1857_v8, %v1688_v7  ;;  %v1798_v11 = vld [vmem:[%s2780_s5 + $0x154] sm:$0xf]  ;;  %v1466_v12 = vld [vmem:[%s2780_s5 + $0x16c] sm:$0xf0]  ;;  %v1436_v16 = vld [vmem:[%s2780_s5 + $0x118] sm:$0xf] }
  0x19   :  { %171 = vmatpush.bf16.msrb.mxu2 %v1263_v38  ;;  %v1854_v13 = vld [vmem:[%s2780_s5 + $0x314] sm:$0xf]  ;;  %v1469_v14 = vor.u32 %v1798_v11, %v1466_v12  ;;  %v1690_v15 = vld [vmem:[%s2780_s5 + $0x32c] sm:$0xf0]  ;;  %v192_v18 = vld [vmem:[%s2779_s4] sm:$0x3] }
  0x1a   :  { %184 = vmatpush.bf16.msrb.mxu3 %v1267_v39  ;;  %v1794_v17 = vld [vmem:[%s2780_s5 + $0x130] sm:$0xf0]  ;;  %v1693_v19 = vor.u32 %v1854_v13, %v1690_v15  ;;  %v1660_v20 = vld [vmem:[%s2780_s5 + $0x2d8] sm:$0xf]  ;;  %v1791_v22 = vld [vmem:[%s2780_s5 + $0x11c] sm:$0xf] }
  0x1b   :  { %v1850_v21 = vld [vmem:[%s2780_s5 + $0x2f0] sm:$0xf0]  ;;  %961 = vmatpush.bf16.msra.mxu0 %v1465_v9  ;;  %v1437_v23 = vor.u32 %v1794_v17, %v1436_v16  ;;  %v1438_v24 = vld [vmem:[%s2780_s5 + $0x134] sm:$0xf0]  ;;  %v1847_v25 = vld [vmem:[%s2780_s5 + $0x2dc] sm:$0xf] }
  0x1c   :  { %v1662_v26 = vld [vmem:[%s2780_s5 + $0x2f4] sm:$0xf0]  ;;  %974 = vmatpush.bf16.msra.mxu1 %v1689_v10  ;;  %v1661_v27 = vor.u32 %v1850_v21, %v1660_v20  ;;  %v1441_v28 = vor.u32 %v1791_v22, %v1438_v24  ;;  %v1408_v29 = vld [vmem:[%s2780_s5 + $0xe0] sm:$0xf]  ;;  %v1787_v30 = vld [vmem:[%s2780_s5 + $0xf8] sm:$0xf0] }
  0x1d   :  { %172 = vmatpush.bf16.msrb.mxu2 %v1255_v44  ;;  %v1632_v31 = vld [vmem:[%s2780_s5 + $0x2a0] sm:$0xf]  ;;  %v1665_v32 = vor.u32 %v1847_v25, %v1662_v26  ;;  %v1843_v33 = vld [vmem:[%s2780_s5 + $0x2b8] sm:$0xf0]  ;;  %v1784_v34 = vld [vmem:[%s2780_s5 + $0xe4] sm:$0xf]  ;;  %v1409_v40 = vor.u32 %v1787_v30, %v1408_v29 }
  0x1e   :  { %185 = vmatpush.bf16.msrb.mxu3 %v1259_v45  ;;  %v1410_v35 = vld [vmem:[%s2780_s5 + $0xfc] sm:$0xf0]  ;;  %v1840_v36 = vld [vmem:[%s2780_s5 + $0x2a4] sm:$0xf]  ;;  %v194_v38 = vperm.slane %v192_v18, 0  ;;  %v195_v39 = vperm.slane %v192_v18, 1  ;;  %v1633_v42 = vor.u32 %v1843_v33, %v1632_v31 }
  0x1f   :  { %v1634_v37 = vld [vmem:[%s2780_s5 + $0x2bc] sm:$0xf0]  ;;  %962 = vmatpush.bf16.msra.mxu0 %v1437_v23  ;;  %v1380_v41 = vld [vmem:[%s2780_s5 + $0xa8] sm:$0xf]  ;;  %v1413_v43 = vor.u32 %v1784_v34, %v1410_v35  ;;  %v1780_v44 = vld [vmem:[%s2780_s5 + $0xc0] sm:$0xf0] }
  0x20   :  { %975 = vmatpush.bf16.msra.mxu1 %v1661_v27  ;;  %v1604_v45 = vld [vmem:[%s2780_s5 + $0x268] sm:$0xf]  ;;  %v1836_v46 = vld [vmem:[%s2780_s5 + $0x280] sm:$0xf0]  ;;  %v1637_v49 = vor.u32 %v1840_v36, %v1634_v37  ;;  %v1381_v58 = vor.u32 %v1780_v44, %v1380_v41  ;;  %v1352_v12 = vld [vmem:[%s2780_s5 + $0x70] sm:$0xf] }
  0x21   :  { %173 = vmatpush.bf16.msrb.mxu2 %v1247_v50  ;;  %v1777_v50 = vld [vmem:[%s2780_s5 + $0xac] sm:$0xf]  ;;  %v1606_v57 = vld [vmem:[%s2780_s5 + $0x284] sm:$0xf0]  ;;  %v1605_v59 = vor.u32 %v1836_v46, %v1604_v45  ;;  %v1770_v17 = vld [vmem:[%s2780_s5 + $0x74] sm:$0xf] }
  0x22   :  { %186 = vmatpush.bf16.msrb.mxu3 %v1251_v51  ;;  %v1382_v51 = vld [vmem:[%s2780_s5 + $0xc4] sm:$0xf0]  ;;  %v1773_v13 = vld [vmem:[%s2780_s5 + $0x88] sm:$0xf0]  ;;  %v1354_v18 = vld [vmem:[%s2780_s5 + $0x8c] sm:$0xf0] }
  0x23   :  { %963 = vmatpush.bf16.msra.mxu0 %v1409_v40  ;;  %v1385_v62 = vor.u32 %v1777_v50, %v1382_v51  ;;  %v1353_v15 = vor.u32 %v1773_v13, %v1352_v12  ;;  %v1829_v16 = vld [vmem:[%s2780_s5 + $0x248] sm:$0xf0]  ;;  %v1357_v20 = vor.u32 %v1770_v17, %v1354_v18  ;;  %v1826_v21 = vld [vmem:[%s2780_s5 + $0x234] sm:$0xf]  ;;  %v1578_v22 = vld [vmem:[%s2780_s5 + $0x24c] sm:$0xf0] }
  0x24   :  { %1292 = vmatmul.msk.bf16.vlgmr.msrb.gmra.mxu2 %vm155_vm3, %v28_v52  ;;  %976 = vmatpush.bf16.msra.mxu1 %v1633_v42  ;;  %v1581_v23 = vor.u32 %v1826_v21, %v1578_v22  ;;  %v1324_v24 = vld [vmem:[%s2780_s5 + $0x38] sm:$0xf]  ;;  %v1766_v25 = vld [vmem:[%s2780_s5 + $0x50] sm:$0xf0]  ;;  %v1763_v29 = vld [vmem:[%s2780_s5 + $0x3c] sm:$0xf] }
  0x25   :  { %1293 = vmatmul.msk.bf16.vlgmr.msrb.gmra.mxu3 %vm155_vm3, %v28_v52  ;;  %986 = vmatpush.bf16.msra.mxu2 %v1497_v1  ;;  %v1548_v26 = vld [vmem:[%s2780_s5 + $0x1f8] sm:$0xf]  ;;  %v1325_v27 = vor.u32 %v1766_v25, %v1324_v24  ;;  %v1819_v33 = vld [vmem:[%s2780_s5 + $0x1fc] sm:$0xf]  ;;  %v1296_v36 = vld [vmem:[%s2780_s5] sm:$0xf] }
  0x26   :  { %999 = vmatpush.bf16.msra.mxu3 %v1721_v5  ;;  %v1326_v30 = vld [vmem:[%s2780_s5 + $0x54] sm:$0xf0]  ;;  %v1759_v37 = vld [vmem:[%s2780_s5 + $0x18] sm:$0xf0]  ;;  %v1756_v41 = vld [vmem:[%s2780_s5 + $0x4] sm:$0xf] }
  0x27   :  { %964 = vmatpush.bf16.msra.mxu0 %v1381_v58  ;;  %v1550_v34 = vld [vmem:[%s2780_s5 + $0x214] sm:$0xf0]  ;;  %v1815_v40 = vld [vmem:[%s2780_s5 + $0x1d8] sm:$0xf0]  ;;  %v1298_v42 = vld [vmem:[%s2780_s5 + $0x1c] sm:$0xf0] }
  0x28   :  { %977 = vmatpush.bf16.msra.mxu1 %v1605_v59  ;;  %v1553_v35 = vor.u32 %v1819_v33, %v1550_v34  ;;  %v1301_v44 = vor.u32 %v1756_v41, %v1298_v42  ;;  %v1812_v45 = vld [vmem:[%s2780_s5 + $0x1c4] sm:$0xf]  ;;  %v1522_v46 = vld [vmem:[%s2780_s5 + $0x1dc] sm:$0xf0]  ;;  %v1724_v50 = vld [vmem:[%s2780_s5 + $0x350] sm:$0xf] }
  0x29   :  { %987 = vmatpush.bf16.msra.mxu2 %v1469_v14  ;;  %v1576_v14 = vld [vmem:[%s2780_s5 + $0x230] sm:$0xf]  ;;  %v1865_v51 = vld [vmem:[%s2780_s5 + $0x368] sm:$0xf0]  ;;  %v1862_v58 = vld [vmem:[%s2780_s5 + $0x354] sm:$0xf] }
  0x2a   :  { %1000 = vmatpush.bf16.msra.mxu3 %v1693_v19  ;;  %v1577_v19 = vor.u32 %v1829_v16, %v1576_v14  ;;  %v1668_v12 = vld [vmem:[%s2780_s5 + $0x2e0] sm:$0xf]  ;;  %v1851_v14 = vld [vmem:[%s2780_s5 + $0x2f8] sm:$0xf0]  ;;  %v1416_v22 = vld [vmem:[%s2780_s5 + $0xe8] sm:$0xf] }
  0x2b   :  { %965 = vmatpush.bf16.msra.mxu0 %v1353_v15  ;;  %v1792_v15 = vld [vmem:[%s2780_s5 + $0x124] sm:$0xf]  ;;  %v1446_v16 = vld [vmem:[%s2780_s5 + $0x13c] sm:$0xf0]  ;;  %v1669_v17 = vor.u32 %v1851_v14, %v1668_v12  ;;  %v1640_v24 = vld [vmem:[%s2780_s5 + $0x2a8] sm:$0xf] }
  0x2c   :  { %978 = vmatpush.bf16.msra.mxu1 %v1577_v19  ;;  %v1449_v18 = vor.u32 %v1792_v15, %v1446_v16  ;;  %v1848_v19 = vld [vmem:[%s2780_s5 + $0x2e4] sm:$0xf]  ;;  %v1388_v34 = vld [vmem:[%s2780_s5 + $0xb0] sm:$0xf]  ;;  %v1757_v16 = vld [vmem:[%s2780_s5 + $0xc] sm:$0xf] }
  0x2d   :  { %988 = vmatpush.bf16.msra.mxu2 %v1441_v28  ;;  %v1822_v28 = vld [vmem:[%s2780_s5 + $0x210] sm:$0xf0]  ;;  %v1816_v14 = vld [vmem:[%s2780_s5 + $0x1e0] sm:$0xf0]  ;;  %vm1185_vm10 = vcmask 1040384   ;;  %vm1189_vm12 = vcmask 1042434  }
  0x2e   :  { %1001 = vmatpush.bf16.msra.mxu3 %v1665_v32  ;;  %v1549_v31 = vor.u32 %v1822_v28, %v1548_v26  ;;  %v1329_v32 = vor.u32 %v1763_v29, %v1326_v30  ;;  %v1844_v26 = vld [vmem:[%s2780_s5 + $0x2c0] sm:$0xf0]  ;;  %v1418_v28 = vld [vmem:[%s2780_s5 + $0x104] sm:$0xf0]  ;;  %vm1208_vm11 = vmor %vm1207_vm9, %vm1185_vm10  ;;  %vm1210_vm14 = vcmask 1043459   ;;  %vm1194_vm0 = vcmask 1044484  }
  0x2f   :  { %966 = vmatpush.bf16.msra.mxu0 %v1325_v27  ;;  %v1785_v27 = vld [vmem:[%s2780_s5 + $0xec] sm:$0xf]  ;;  %v1641_v29 = vor.u32 %v1844_v26, %v1640_v24  ;;  %vm1209_vm13 = vmor %vm1189_vm12, %vm1208_vm11  ;;  %vm1213_vm3 = vcmask 1045509   ;;  %s1225_s17 = sshll.u32 %s2782_s7, 4  ;;  %s1226_s17 = int_to_ptr.hbm [resolvable:$true] %s1225_s17 }
  0x30   :  { %979 = vmatpush.bf16.msra.mxu1 %v1549_v31  ;;  %v1421_v30 = vor.u32 %v1785_v27, %v1418_v28  ;;  %v1841_v31 = vld [vmem:[%s2780_s5 + $0x2ac] sm:$0xf]  ;;  %vm1211_vm15 = vmor %vm1210_vm14, %vm1209_vm13 }
  0x31   :  { %989 = vmatpush.bf16.msra.mxu2 %v1413_v43  ;;  %vm1212_vm2 = vmor %vm1194_vm0, %vm1211_vm15 }
  0x32   :  { %1002 = vmatpush.bf16.msra.mxu3 %v1637_v49  ;;  %v1809_v49 = vld [vmem:[%s2780_s5 + $0x1a8] sm:$0xf0] }
  0x35   :  { %990 = vmatpush.bf16.msra.mxu2 %v1385_v62  ;;  %v1802_v62 = vld [vmem:[%s2780_s5 + $0x170] sm:$0xf0] }
  0x39   :  { %991 = vmatpush.bf16.msra.mxu2 %v1357_v20  ;;  %v1670_v20 = vld [vmem:[%s2780_s5 + $0x2fc] sm:$0xf0] }
  0x3a   :  { %v1673_v21 = vor.u32 %v1848_v19, %v1670_v20  ;;  %v1530_v20 = vld [vmem:[%s2780_s5 + $0x1e4] sm:$0xf0] }
  0x3d   :  { %992 = vmatpush.bf16.msra.mxu2 %v1329_v32  ;;  %v1642_v32 = vld [vmem:[%s2780_s5 + $0x2c4] sm:$0xf0] }
  0x3e   :  { %v1645_v33 = vor.u32 %v1841_v31, %v1642_v32 }
  0x41   :  { %993 = vmatpush.bf16.msra.mxu2 %v1301_v44  ;;  %v1614_v44 = vld [vmem:[%s2780_s5 + $0x28c] sm:$0xf0] }
  0x8b   :  { %v2047_v53 = vpop.f32.mrf.mxu2 }
  0x8c   :  { %v2049_v54 = vpop.f32.mrf.mxu3 }
  0x93   :  { %v75_v55 = vpop.f32.mrf.mxu2 }
  0x94   :  { %v88_v56 = vpop.f32.mrf.mxu3 }
  0x95   :  { %v1833_v56 = vld [vmem:[%s2780_s5 + $0x26c] sm:$0xf] }
  0xa7   :  { %v175_v47 = vpop.f32.mrf.mxu2 }
  0xa8   :  { %v188_v48 = vpop.f32.mrf.mxu3  ;;  %v176_v52 = vadd.f32 %v175_v47, %v2047_v53  ;;  %v1609_v53 = vor.u32 %v1833_v56, %v1606_v57  ;;  %v1500_v47 = vld [vmem:[%s2780_s5 + $0x190] sm:$0xf]  ;;  %v1806_v56 = vld [vmem:[%s2780_s5 + $0x194] sm:$0xf] }
  0xa9   :  { %v189_v55 = vadd.f32 %v188_v48, %v2049_v54  ;;  %v1525_v48 = vor.u32 %v1812_v45, %v1522_v46  ;;  %v1502_v57 = vld [vmem:[%s2780_s5 + $0x1ac] sm:$0xf0]  ;;  %v1360_v46 = vld [vmem:[%s2780_s5 + $0x78] sm:$0xf] }
  0xaa   :  { %v198_v60 = vadd.f32 %v194_v38, %v176_v52  ;;  %1003 = vmatpush.bf16.msra.mxu3 %v1609_v53  ;;  %v1520_v38 = vld [vmem:[%s2780_s5 + $0x1c0] sm:$0xf]  ;;  %v1501_v52 = vor.u32 %v1809_v49, %v1500_v47  ;;  %v1505_v59 = vor.u32 %v1806_v56, %v1502_v57  ;;  %v1774_v47 = vld [vmem:[%s2780_s5 + $0x90] sm:$0xf0]  ;;  %v1827_v57 = vld [vmem:[%s2780_s5 + $0x23c] sm:$0xf] }
  0xab   :  { %v199_v61 = vadd.f32 %v195_v39, %v189_v55  ;;  %v1297_v39 = vor.u32 %v1759_v37, %v1296_v36  ;;  %v1521_v43 = vor.u32 %v1815_v40, %v1520_v38  ;;  %v1725_v55 = vor.u32 %v1865_v51, %v1724_v50  ;;  %v1612_v36 = vld [vmem:[%s2780_s5 + $0x270] sm:$0xf]  ;;  %v1837_v38 = vld [vmem:[%s2780_s5 + $0x288] sm:$0xf0]  ;;  %v1830_v50 = vld [vmem:[%s2780_s5 + $0x250] sm:$0xf0] }
  0xac   :  { %v202_v63 = vmul.f32 0.02, %v198_v60  ;;  %vm200_vm4 = vcmp.gt.f32.partialorder %v198_v60, 0.0  ;;  %1038 = vmatpush.bf16.msrb.mxu2 %v1505_v59  ;;  %v1390_v40 = vld [vmem:[%s2780_s5 + $0xcc] sm:$0xf0]  ;;  %v1613_v41 = vor.u32 %v1837_v38, %v1612_v36  ;;  %v1361_v49 = vor.u32 %v1774_v47, %v1360_v46 }
  0xad   :  { %v203_v54 = vmul.f32 0.02, %v199_v61  ;;  %vm201_vm5 = vcmp.gt.f32.partialorder %v199_v61, 0.0  ;;  %967 = vmatpush.bf16.msra.mxu0 %v1297_v39  ;;  %980 = vmatpush.bf16.msra.mxu1 %v1521_v43  ;;  %v1778_v39 = vld [vmem:[%s2780_s5 + $0xb4] sm:$0xf] }
  0xae   :  { %v2176_v0 = vsel %vm200_vm4, %v198_v60, %v202_v63  ;;  %1004 = vmatpush.bf16.msra.mxu3 %v1581_v23  ;;  %v1726_v60 = vld [vmem:[%s2780_s5 + $0x36c] sm:$0xf0]  ;;  %v1788_v23 = vld [vmem:[%s2780_s5 + $0x100] sm:$0xf0]  ;;  %v1393_v42 = vor.u32 %v1778_v39, %v1390_v40  ;;  %v1834_v43 = vld [vmem:[%s2780_s5 + $0x274] sm:$0xf] }
  0xaf   :  { %v2178_v1 = vsel %vm201_vm5, %v199_v61, %v203_v54  ;;  %v177_v2 = vpop.f32.mrf.mxu2  ;;  %v206_v4 = vsel %vm159_vm1, %v2176_v0, 0.0  ;;  %v211_v7 = vmul.f32 %v2176_v0, %v2176_v0  ;;  %v1472_v61 = vld [vmem:[%s2780_s5 + $0x158] sm:$0xf]  ;;  %v1729_v53 = vor.u32 %v1862_v58, %v1726_v60  ;;  %v1771_v51 = vld [vmem:[%s2780_s5 + $0x7c] sm:$0xf]  ;;  %vm1214_vm5 = vmor %vm1213_vm3, %vm1212_vm2 }
  0xb0   :  { %v190_v3 = vpop.f32.mrf.mxu3  ;;  %v207_v5 = vsel %vm159_vm1, %v2178_v1, 0.0  ;;  %v212_v8 = vmul.f32 %v2178_v1, %v2178_v1  ;;  %v1473_v63 = vor.u32 %v1802_v62, %v1472_v61  ;;  %v1696_v54 = vld [vmem:[%s2780_s5 + $0x318] sm:$0xf]  ;;  %v1858_v2 = vld [vmem:[%s2780_s5 + $0x330] sm:$0xf0]  ;;  %v1417_v25 = vor.u32 %v1788_v23, %v1416_v22 }
  0xb1   :  { %v208_v6 = vadd.f32 %v207_v5, %v206_v4  ;;  %v213_v9 = vsel %vm159_vm1, %v211_v7, 0.0  ;;  %1012 = vmatpush.bf16.msrb.mxu0 %v1501_v52  ;;  %1025 = vmatpush.bf16.msrb.mxu1 %v1725_v55  ;;  %v1799_v3 = vld [vmem:[%s2780_s5 + $0x15c] sm:$0xf]  ;;  %v1697_v4 = vor.u32 %v1858_v2, %v1696_v54  ;;  %v1474_v5 = vld [vmem:[%s2780_s5 + $0x174] sm:$0xf0]  ;;  %v1617_v45 = vor.u32 %v1834_v43, %v1614_v44 }
  0xb2   :  { %v214_v10 = vsel %vm159_vm1, %v212_v8, 0.0  ;;  %1005 = vmatpush.bf16.msra.mxu3 %v1553_v35  ;;  %v1698_v7 = vld [vmem:[%s2780_s5 + $0x334] sm:$0xf0]  ;;  %v1477_v8 = vor.u32 %v1799_v3, %v1474_v5  ;;  %v1781_v35 = vld [vmem:[%s2780_s5 + $0xc8] sm:$0xf0]  ;;  %vm1198_vm4 = vcmask 1046534  }
  0xb3   :  { %209 = vadd.xlane.f32.xlu0 %v208_v6  ;;  %v215_v11 = vadd.f32 %v214_v10, %v213_v9  ;;  %v1855_v6 = vld [vmem:[%s2780_s5 + $0x31c] sm:$0xf]  ;;  %v1444_v10 = vld [vmem:[%s2780_s5 + $0x120] sm:$0xf]  ;;  %v1389_v37 = vor.u32 %v1781_v35, %v1388_v34  ;;  %v1362_v52 = vld [vmem:[%s2780_s5 + $0x94] sm:$0xf0] }
  0xb4   :  { %v1701_v9 = vor.u32 %v1855_v6, %v1698_v7  ;;  %1039 = vmatpush.bf16.msrb.mxu2 %v1477_v8  ;;  %v1365_v56 = vor.u32 %v1771_v51, %v1362_v52  ;;  %v1586_v58 = vld [vmem:[%s2780_s5 + $0x254] sm:$0xf0]  ;;  %v1332_v60 = vld [vmem:[%s2780_s5 + $0x40] sm:$0xf]  ;;  %v1767_v61 = vld [vmem:[%s2780_s5 + $0x58] sm:$0xf0] }
  0xb5   :  { %1013 = vmatpush.bf16.msrb.mxu0 %v1473_v63  ;;  %1026 = vmatpush.bf16.msrb.mxu1 %v1697_v4  ;;  %v1589_v59 = vor.u32 %v1827_v57, %v1586_v58  ;;  %v1556_v62 = vld [vmem:[%s2780_s5 + $0x200] sm:$0xf]  ;;  %v1333_v63 = vor.u32 %v1767_v61, %v1332_v60  ;;  %v1823_v54 = vld [vmem:[%s2780_s5 + $0x218] sm:$0xf0]  ;;  %v1764_v2 = vld [vmem:[%s2780_s5 + $0x44] sm:$0xf] }
  0xb6   :  { %1006 = vmatpush.bf16.msra.mxu3 %v1525_v48  ;;  %v1584_v48 = vld [vmem:[%s2780_s5 + $0x238] sm:$0xf]  ;;  %v1334_v3 = vld [vmem:[%s2780_s5 + $0x5c] sm:$0xf0]  ;;  %v1557_v4 = vor.u32 %v1823_v54, %v1556_v62  ;;  %v1820_v6 = vld [vmem:[%s2780_s5 + $0x204] sm:$0xf] }
  0xb7   :  { %v1585_v55 = vor.u32 %v1830_v50, %v1584_v48  ;;  %v1337_v5 = vor.u32 %v1764_v2, %v1334_v3  ;;  %v1558_v7 = vld [vmem:[%s2780_s5 + $0x21c] sm:$0xf0]  ;;  %v1508_v36 = vld [vmem:[%s2780_s5 + $0x198] sm:$0xf]  ;;  %v1863_v43 = vld [vmem:[%s2780_s5 + $0x35c] sm:$0xf] }
  0xb8   :  { %1040 = vmatpush.bf16.msrb.mxu2 %v1449_v18  ;;  %v1561_v8 = vor.u32 %v1820_v6, %v1558_v7  ;;  %v1813_v18 = vld [vmem:[%s2780_s5 + $0x1cc] sm:$0xf]  ;;  %v1732_v39 = vld [vmem:[%s2780_s5 + $0x358] sm:$0xf]  ;;  %v1803_v50 = vld [vmem:[%s2780_s5 + $0x178] sm:$0xf0] }
  0xb9   :  { %1027 = vmatpush.bf16.msrb.mxu1 %v1669_v17  ;;  %v1306_v17 = vld [vmem:[%s2780_s5 + $0x24] sm:$0xf0]  ;;  %v1734_v44 = vld [vmem:[%s2780_s5 + $0x374] sm:$0xf0]  ;;  %v1800_v57 = vld [vmem:[%s2780_s5 + $0x164] sm:$0xf] }
  0xba   :  { %1051 = vmatpush.bf16.msrb.mxu3 %v1729_v53  ;;  %v1309_v19 = vor.u32 %v1757_v16, %v1306_v17  ;;  %v1737_v52 = vor.u32 %v1863_v43, %v1734_v44  ;;  %v1482_v58 = vld [vmem:[%s2780_s5 + $0x17c] sm:$0xf0]  ;;  %v1676_v3 = vld [vmem:[%s2780_s5 + $0x2e8] sm:$0xf]  ;;  %v1849_v7 = vld [vmem:[%s2780_s5 + $0x2ec] sm:$0xf] }
  0xbb   :  { %216 = vadd.xlane.f32.xlu0 %v215_v11  ;;  %v1795_v11 = vld [vmem:[%s2780_s5 + $0x138] sm:$0xf0]  ;;  %v1706_v60 = vld [vmem:[%s2780_s5 + $0x33c] sm:$0xf0]  ;;  %v1485_v54 = vor.u32 %v1800_v57, %v1482_v58  ;;  %v1454_v6 = vld [vmem:[%s2780_s5 + $0x144] sm:$0xf0] }
  0xbc   :  { %v1445_v13 = vor.u32 %v1795_v11, %v1444_v10  ;;  %1041 = vmatpush.bf16.msrb.mxu2 %v1421_v30  ;;  %v1760_v10 = vld [vmem:[%s2780_s5 + $0x20] sm:$0xf0]  ;;  %v1528_v11 = vld [vmem:[%s2780_s5 + $0x1c8] sm:$0xf]  ;;  %v1845_v16 = vld [vmem:[%s2780_s5 + $0x2c8] sm:$0xf0] }
  0xbd   :  { %1028 = vmatpush.bf16.msrb.mxu1 %v1641_v29  ;;  %v1529_v15 = vor.u32 %v1816_v14, %v1528_v11  ;;  %v1424_v11 = vld [vmem:[%s2780_s5 + $0xf0] sm:$0xf]  ;;  %v1786_v17 = vld [vmem:[%s2780_s5 + $0xf4] sm:$0xf]  ;;  %v1821_v57 = vld [vmem:[%s2780_s5 + $0x20c] sm:$0xf] }
  0xbe   :  { %1052 = vmatpush.bf16.msrb.mxu3 %v1701_v9  ;;  %1014 = vmatpush.bf16.msrb.mxu0 %v1445_v13  ;;  %v1304_v9 = vld [vmem:[%s2780_s5 + $0x8] sm:$0xf] }
  0xbf   :  { %v1305_v13 = vor.u32 %v1760_v10, %v1304_v9  ;;  %v1566_v58 = vld [vmem:[%s2780_s5 + $0x224] sm:$0xf0] }
  0xc0   :  { %1042 = vmatpush.bf16.msrb.mxu2 %v1393_v42  ;;  %v1510_v42 = vld [vmem:[%s2780_s5 + $0x1b4] sm:$0xf0] }
  0xc1   :  { %1029 = vmatpush.bf16.msrb.mxu1 %v1613_v41 }
  0xc2   :  { %1053 = vmatpush.bf16.msrb.mxu3 %v1673_v21  ;;  %1015 = vmatpush.bf16.msrb.mxu0 %v1417_v25  ;;  %v1533_v21 = vor.u32 %v1813_v18, %v1530_v20  ;;  %v1426_v18 = vld [vmem:[%s2780_s5 + $0x10c] sm:$0xf0] }
  0xc3   :  { %v1650_v20 = vld [vmem:[%s2780_s5 + $0x2cc] sm:$0xf0] }
  0xc4   :  { %1043 = vmatpush.bf16.msrb.mxu2 %v1365_v56  ;;  %v1859_v56 = vld [vmem:[%s2780_s5 + $0x338] sm:$0xf0] }
  0xc5   :  { %1030 = vmatpush.bf16.msrb.mxu1 %v1585_v55  ;;  %v1704_v55 = vld [vmem:[%s2780_s5 + $0x320] sm:$0xf] }
  0xc6   :  { %1054 = vmatpush.bf16.msrb.mxu3 %v1645_v33  ;;  %1016 = vmatpush.bf16.msrb.mxu0 %v1389_v37  ;;  %v1810_v37 = vld [vmem:[%s2780_s5 + $0x1b0] sm:$0xf0]  ;;  %v1705_v62 = vor.u32 %v1859_v56, %v1704_v55  ;;  %v1765_v55 = vld [vmem:[%s2780_s5 + $0x4c] sm:$0xf]  ;;  %v1342_v56 = vld [vmem:[%s2780_s5 + $0x64] sm:$0xf0] }
  0xc7   :  { %v1509_v47 = vor.u32 %v1810_v37, %v1508_v36  ;;  %v1775_v36 = vld [vmem:[%s2780_s5 + $0x98] sm:$0xf0] }
  0xc8   :  { %1044 = vmatpush.bf16.msrb.mxu2 %v1337_v5  ;;  %v1793_v5 = vld [vmem:[%s2780_s5 + $0x12c] sm:$0xf] }
  0xc9   :  { %1031 = vmatpush.bf16.msrb.mxu1 %v1557_v4  ;;  %v1852_v4 = vld [vmem:[%s2780_s5 + $0x300] sm:$0xf0] }
  0xca   :  { %1055 = vmatpush.bf16.msrb.mxu3 %v1617_v45  ;;  %1017 = vmatpush.bf16.msrb.mxu0 %v1361_v49  ;;  %v1480_v49 = vld [vmem:[%s2780_s5 + $0x160] sm:$0xf]  ;;  %v1677_v10 = vor.u32 %v1852_v4, %v1676_v3  ;;  %v1758_v3 = vld [vmem:[%s2780_s5 + $0x14] sm:$0xf]  ;;  %v1314_v4 = vld [vmem:[%s2780_s5 + $0x2c] sm:$0xf0] }
  0xcb   :  { %v1481_v61 = vor.u32 %v1803_v50, %v1480_v49 }
  0xcc   :  { %1045 = vmatpush.bf16.msrb.mxu2 %v1309_v19  ;;  %v1842_v19 = vld [vmem:[%s2780_s5 + $0x2b4] sm:$0xf] }
  0xcd   :  { %1032 = vmatpush.bf16.msrb.mxu1 %v1529_v15  ;;  %v1648_v15 = vld [vmem:[%s2780_s5 + $0x2b0] sm:$0xf] }
  0xce   :  { %1056 = vmatpush.bf16.msrb.mxu3 %v1589_v59  ;;  %1018 = vmatpush.bf16.msrb.mxu0 %v1333_v63  ;;  %v1856_v59 = vld [vmem:[%s2780_s5 + $0x324] sm:$0xf] }
  0xcf   :  { %v1796_v63 = vld [vmem:[%s2780_s5 + $0x140] sm:$0xf0]  ;;  %v1709_v2 = vor.u32 %v1856_v59, %v1706_v60 }
  0xd2   :  { %1057 = vmatpush.bf16.msrb.mxu3 %v1561_v8  ;;  %1019 = vmatpush.bf16.msrb.mxu0 %v1305_v13  ;;  %v1678_v8 = vld [vmem:[%s2780_s5 + $0x304] sm:$0xf0]  ;;  %v1457_v13 = vor.u32 %v1793_v5, %v1454_v6  ;;  %v1814_v5 = vld [vmem:[%s2780_s5 + $0x1d4] sm:$0xf]  ;;  %v1538_v6 = vld [vmem:[%s2780_s5 + $0x1ec] sm:$0xf0] }
  0xd3   :  { %v1681_v14 = vor.u32 %v1849_v7, %v1678_v8  ;;  %v1516_v7 = vld [vmem:[%s2780_s5 + $0x1a0] sm:$0xf]  ;;  %v1811_v8 = vld [vmem:[%s2780_s5 + $0x1b8] sm:$0xf0] }
  0xd6   :  { %1058 = vmatpush.bf16.msrb.mxu3 %v1533_v21 }
 0x126   :  { %v210_v53 = vpop.xlane.xlu0 %209 }
 0x127   :  { %v218_v12 = vmul.f32 0.005, %v210_v53  ;;  %v1452_v53 = vld [vmem:[%s2780_s5 + $0x128] sm:$0xf] }
 0x128   :  { %v1453_v9 = vor.u32 %v1796_v63, %v1452_v53  ;;  %v1536_v53 = vld [vmem:[%s2780_s5 + $0x1d0] sm:$0xf]  ;;  %v1345_v63 = vor.u32 %v1765_v55, %v1342_v56  ;;  %v1320_v55 = vld [vmem:[%s2780_s5 + $0x18] sm:$0xf]  ;;  %v1762_v56 = vld [vmem:[%s2780_s5 + $0x30] sm:$0xf0] }
 0x129   :  { %v220_v23 = vmul.f32 %v218_v12, %v218_v12  ;;  %v223_v34 = vsub.f32 %v2176_v0, %v218_v12  ;;  %v224_v35 = vsub.f32 %v2178_v1, %v218_v12  ;;  %v1866_v0 = vld [vmem:[%s2780_s5 + $0x370] sm:$0xf0]  ;;  %v1807_v1 = vld [vmem:[%s2780_s5 + $0x19c] sm:$0xf]  ;;  %v1789_v12 = vld [vmem:[%s2780_s5 + $0x108] sm:$0xf0] }
 0x12a   :  { %v1733_v48 = vor.u32 %v1866_v0, %v1732_v39  ;;  %v1513_v51 = vor.u32 %v1807_v1, %v1510_v42  ;;  %v1425_v21 = vor.u32 %v1789_v12, %v1424_v11  ;;  %v1592_v39 = vld [vmem:[%s2780_s5 + $0x240] sm:$0xf]  ;;  %v1831_v0 = vld [vmem:[%s2780_s5 + $0x258] sm:$0xf0]  ;;  %v1772_v1 = vld [vmem:[%s2780_s5 + $0x84] sm:$0xf] }
 0x12b   :  { %v1594_v42 = vld [vmem:[%s2780_s5 + $0x25c] sm:$0xf0]  ;;  %v1593_v44 = vor.u32 %v1831_v0, %v1592_v39 }
 0x12e   :  { %v217_v22 = vpop.xlane.xlu0 %216 }
 0x12f   :  { %v219_v24 = vmul.f32 0.005, %v217_v22  ;;  %v1649_v22 = vor.u32 %v1845_v16, %v1648_v15  ;;  %v1517_v15 = vor.u32 %v1811_v8, %v1516_v7 }
 0x131   :  { %v221_v25 = vsub.f32 %v219_v24, %v220_v23  ;;  %v1396_v23 = vld [vmem:[%s2780_s5 + $0xb8] sm:$0xf]  ;;  %v1782_v24 = vld [vmem:[%s2780_s5 + $0xd0] sm:$0xf0] }
 0x133   :  { %v222_v26 = vmax.f32 %v221_v25, 0.0  ;;  %v1429_v25 = vor.u32 %v1786_v17, %v1426_v18  ;;  %v1488_v17 = vld [vmem:[%s2780_s5 + $0x168] sm:$0xf]  ;;  %v1804_v18 = vld [vmem:[%s2780_s5 + $0x180] sm:$0xf0] }
 0x135   :  { %v225_v27 = vadd.f32 1e-05, %v222_v26  ;;  %v1653_v26 = vor.u32 %v1842_v19, %v1650_v20  ;;  %v1712_v19 = vld [vmem:[%s2780_s5 + $0x328] sm:$0xf]  ;;  %v1860_v20 = vld [vmem:[%s2780_s5 + $0x340] sm:$0xf0] }
 0x137   :  { %1869 = vrsqrt.f32 %v225_v27  ;;  %vm232_vm7 = vweird.f32 %v225_v27 }
 0x13d   :  { %v1870_v28 = vpop.eup %1869 }
 0x13e   :  { %v227_v29 = vmul.f32 %v1870_v28, %v225_v27  ;;  %vm233_vm6 = vweird.f32 %v1870_v28  ;;  %v1620_v27 = vld [vmem:[%s2780_s5 + $0x278] sm:$0xf] }
 0x13f   :  { %vm234_vm8 = vmor %vm232_vm7, %vm233_vm6  ;;  %vm1215_vm6 = vcmask 129030   ;;  %vm1202_vm7 = vcmask 1045508  }
 0x140   :  { %v228_v30 = vmul.f32 %v1870_v28, %v227_v29  ;;  %v1779_v29 = vld [vmem:[%s2780_s5 + $0xbc] sm:$0xf]  ;;  %vm1216_vm9 = vmor %vm1215_vm6, %vm1214_vm5 }
 0x142   :  { %v229_v31 = vmul.f32 0.5, %v228_v30  ;;  %v1398_v30 = vld [vmem:[%s2780_s5 + $0xd4] sm:$0xf0] }
 0x143   :  { %v1401_v37 = vor.u32 %v1779_v29, %v1398_v30  ;;  %v1432_v29 = vld [vmem:[%s2780_s5 + $0xf8] sm:$0xf]  ;;  %v1790_v30 = vld [vmem:[%s2780_s5 + $0x110] sm:$0xf0] }
 0x144   :  { %v230_v32 = vsub.f32 1.5, %v229_v31  ;;  %v1835_v31 = vld [vmem:[%s2780_s5 + $0x27c] sm:$0xf] }
 0x146   :  { %v231_v33 = vmul.f32 %v1870_v28, %v230_v32  ;;  %v1622_v32 = vld [vmem:[%s2780_s5 + $0x294] sm:$0xf0] }
 0x148   :  { %v235_v38 = vsel %vm234_vm8, %v1870_v28, %v231_v33  ;;  %v1838_v28 = vld [vmem:[%s2780_s5 + $0x290] sm:$0xf0]  ;;  %v1397_v33 = vor.u32 %v1782_v24, %v1396_v23  ;;  %v1460_v23 = vld [vmem:[%s2780_s5 + $0x130] sm:$0xf]  ;;  %v1797_v24 = vld [vmem:[%s2780_s5 + $0x148] sm:$0xf0] }
 0x149   :  { %v236_v40 = vmul.f32 %v235_v38, %v223_v34  ;;  %v237_v41 = vmul.f32 %v235_v38, %v224_v35  ;;  %v1621_v34 = vor.u32 %v1838_v28, %v1620_v27  ;;  %v1368_v35 = vld [vmem:[%s2780_s5 + $0x80] sm:$0xf]  ;;  %v1625_v38 = vor.u32 %v1835_v31, %v1622_v32  ;;  %v1656_v31 = vld [vmem:[%s2780_s5 + $0x2b8] sm:$0xf]  ;;  %v1846_v32 = vld [vmem:[%s2780_s5 + $0x2d0] sm:$0xf0] }
 0x14a   :  { %v1369_v43 = vor.u32 %v1775_v36, %v1368_v35  ;;  %v1461_v27 = vor.u32 %v1797_v24, %v1460_v23  ;;  %v1404_v35 = vld [vmem:[%s2780_s5 + $0xc0] sm:$0xf]  ;;  %v1783_v36 = vld [vmem:[%s2780_s5 + $0xd8] sm:$0xf0]  ;;  %vm1204_vm8 = vcmask 1043456  }
 0x14b   :  { %v2480_v45 = vpack.c.bf16 %v236_v40, %v236_v40  ;;  %v2482_v46 = vpack.c.bf16 %v237_v41, %v237_v41  ;;  %v1370_v40 = vld [vmem:[%s2780_s5 + $0x9c] sm:$0xf0]  ;;  %v1828_v41 = vld [vmem:[%s2780_s5 + $0x244] sm:$0xf]  ;;  %v1405_v39 = vor.u32 %v1783_v36, %v1404_v35 }
 0x14c   :  { %v1373_v49 = vor.u32 %v1772_v1, %v1370_v40  ;;  %v1597_v50 = vor.u32 %v1828_v41, %v1594_v42  ;;  %v1376_v1 = vld [vmem:[%s2780_s5 + $0x88] sm:$0xf]  ;;  %v1776_v40 = vld [vmem:[%s2780_s5 + $0xa0] sm:$0xf0] }
 0x14d   :  { %968 = vmatmul.bf16.vlgmr.msra.gmra.mxu0 %v2480_v45  ;;  %981 = vmatmul.bf16.vlgmr.msra.gmra.mxu1 %v2482_v46  ;;  %v1600_v41 = vld [vmem:[%s2780_s5 + $0x248] sm:$0xf]  ;;  %v1832_v42 = vld [vmem:[%s2780_s5 + $0x260] sm:$0xf0] }
 0x14e   :  { %994 = vmatmul.bf16.vlgmr.msra.gmra.mxu2 %v2480_v45  ;;  %1007 = vmatmul.bf16.vlgmr.msra.gmra.mxu3 %v2482_v46 }
 0x14f   :  { %1064 = vmatpush.bf16.msra.mxu0 %v1509_v47  ;;  %1077 = vmatpush.bf16.msra.mxu1 %v1733_v48  ;;  %v1340_v47 = vld [vmem:[%s2780_s5 + $0x48] sm:$0xf]  ;;  %v1768_v48 = vld [vmem:[%s2780_s5 + $0x60] sm:$0xf0] }
 0x150   :  { %1090 = vmatpush.bf16.msra.mxu2 %v1513_v51  ;;  %1103 = vmatpush.bf16.msra.mxu3 %v1737_v52  ;;  %v1564_v51 = vld [vmem:[%s2780_s5 + $0x208] sm:$0xf]  ;;  %v1824_v52 = vld [vmem:[%s2780_s5 + $0x220] sm:$0xf0]  ;;  %v1341_v59 = vor.u32 %v1768_v48, %v1340_v47  ;;  %v1348_v47 = vld [vmem:[%s2780_s5 + $0x50] sm:$0xf] }
 0x151   :  { %v1565_v60 = vor.u32 %v1824_v52, %v1564_v51  ;;  %v1769_v48 = vld [vmem:[%s2780_s5 + $0x68] sm:$0xf0] }
 0x152   :  { %v1349_v51 = vor.u32 %v1769_v48, %v1348_v47 }
 0x153   :  { %1065 = vmatpush.bf16.msra.mxu0 %v1481_v61  ;;  %1078 = vmatpush.bf16.msra.mxu1 %v1705_v62  ;;  %v1312_v61 = vld [vmem:[%s2780_s5 + $0x10] sm:$0xf]  ;;  %v1761_v62 = vld [vmem:[%s2780_s5 + $0x28] sm:$0xf0] }
 0x154   :  { %1091 = vmatpush.bf16.msra.mxu2 %v1485_v54  ;;  %1104 = vmatpush.bf16.msra.mxu3 %v1709_v2  ;;  %v1569_v54 = vor.u32 %v1821_v57, %v1566_v58  ;;  %v1817_v2 = vld [vmem:[%s2780_s5 + $0x1e8] sm:$0xf0]  ;;  %v1313_v11 = vor.u32 %v1761_v62, %v1312_v61  ;;  %v1544_v57 = vld [vmem:[%s2780_s5 + $0x1d8] sm:$0xf]  ;;  %v1818_v58 = vld [vmem:[%s2780_s5 + $0x1f0] sm:$0xf0] }
 0x155   :  { %v1537_v12 = vor.u32 %v1817_v2, %v1536_v53 }
 0x157   :  { %1066 = vmatpush.bf16.msra.mxu0 %v1453_v9  ;;  %1079 = vmatpush.bf16.msra.mxu1 %v1677_v10  ;;  %v1740_v9 = vld [vmem:[%s2780_s5 + $0x360] sm:$0xf]  ;;  %v1867_v10 = vld [vmem:[%s2780_s5 + $0x378] sm:$0xf0] }
 0x158   :  { %1092 = vmatpush.bf16.msra.mxu2 %v1457_v13  ;;  %1105 = vmatpush.bf16.msra.mxu3 %v1681_v14  ;;  %v1317_v13 = vor.u32 %v1758_v3, %v1314_v4  ;;  %v1541_v14 = vor.u32 %v1814_v5, %v1538_v6  ;;  %v1741_v16 = vor.u32 %v1867_v10, %v1740_v9 }
 0x15b   :  { %1067 = vmatpush.bf16.msra.mxu0 %v1425_v21  ;;  %1080 = vmatpush.bf16.msra.mxu1 %v1649_v22  ;;  %v1489_v21 = vor.u32 %v1804_v18, %v1488_v17  ;;  %v1713_v22 = vor.u32 %v1860_v20, %v1712_v19 }
 0x15c   :  { %1093 = vmatpush.bf16.msra.mxu2 %v1429_v25  ;;  %1106 = vmatpush.bf16.msra.mxu3 %v1653_v26  ;;  %v1684_v25 = vld [vmem:[%s2780_s5 + $0x2f0] sm:$0xf]  ;;  %v1853_v26 = vld [vmem:[%s2780_s5 + $0x308] sm:$0xf0] }
 0x15d   :  { %1020 = vmatmul.bf16.vlgmr.msrb.gmra.mxu0 %v2480_v45  ;;  %1033 = vmatmul.bf16.vlgmr.msrb.gmra.mxu1 %v2482_v46  ;;  %v1685_v28 = vor.u32 %v1853_v26, %v1684_v25 }
 0x15e   :  { %1046 = vmatmul.bf16.vlgmr.msrb.gmra.mxu2 %v2480_v45  ;;  %1059 = vmatmul.bf16.vlgmr.msrb.gmra.mxu3 %v2482_v46 }
 0x15f   :  { %1068 = vmatpush.bf16.msra.mxu0 %v1397_v33  ;;  %1081 = vmatpush.bf16.msra.mxu1 %v1621_v34  ;;  %v1433_v33 = vor.u32 %v1790_v30, %v1432_v29  ;;  %v1657_v34 = vor.u32 %v1846_v32, %v1656_v31 }
 0x160   :  { %1094 = vmatpush.bf16.msra.mxu2 %v1401_v37  ;;  %1107 = vmatpush.bf16.msra.mxu3 %v1625_v38  ;;  %v1628_v37 = vld [vmem:[%s2780_s5 + $0x280] sm:$0xf]  ;;  %v1839_v38 = vld [vmem:[%s2780_s5 + $0x298] sm:$0xf0] }
 0x161   :  { %v1629_v0 = vor.u32 %v1839_v38, %v1628_v37 }
 0x163   :  { %1069 = vmatpush.bf16.msra.mxu0 %v1369_v43  ;;  %1082 = vmatpush.bf16.msra.mxu1 %v1593_v44  ;;  %v1377_v43 = vor.u32 %v1776_v40, %v1376_v1  ;;  %v1601_v44 = vor.u32 %v1832_v42, %v1600_v41 }
 0x164   :  { %1095 = vmatpush.bf16.msra.mxu2 %v1373_v49  ;;  %1108 = vmatpush.bf16.msra.mxu3 %v1597_v50  ;;  %v1572_v49 = vld [vmem:[%s2780_s5 + $0x210] sm:$0xf]  ;;  %v1825_v50 = vld [vmem:[%s2780_s5 + $0x228] sm:$0xf0] }
 0x165   :  { %v1573_v52 = vor.u32 %v1825_v50, %v1572_v49 }
 0x167   :  { %1070 = vmatpush.bf16.msra.mxu0 %v1341_v59  ;;  %1083 = vmatpush.bf16.msra.mxu1 %v1565_v60  ;;  %v1321_v59 = vor.u32 %v1762_v56, %v1320_v55  ;;  %v1545_v60 = vor.u32 %v1818_v58, %v1544_v57 }
 0x168   :  { %1096 = vmatpush.bf16.msra.mxu2 %v1345_v63  ;;  %1109 = vmatpush.bf16.msra.mxu3 %v1569_v54 }
 0x16b   :  { %1071 = vmatpush.bf16.msra.mxu0 %v1313_v11  ;;  %1084 = vmatpush.bf16.msra.mxu1 %v1537_v12 }
 0x16c   :  { %1097 = vmatpush.bf16.msra.mxu2 %v1317_v13  ;;  %1110 = vmatpush.bf16.msra.mxu3 %v1541_v14 }
 0x16e   :  { %1072 = vmatmul.bf16.vlgmr.msra.gmra.mxu0 %v2480_v45  ;;  %1085 = vmatmul.bf16.vlgmr.msra.gmra.mxu1 %v2482_v46 }
 0x16f   :  { %1116 = vmatpush.bf16.msrb.mxu0 %v1517_v15  ;;  %1129 = vmatpush.bf16.msrb.mxu1 %v1741_v16 }
 0x170   :  { %1098 = vmatmul.bf16.vlgmr.msra.gmra.mxu2 %v2480_v45  ;;  %1111 = vmatmul.bf16.vlgmr.msra.gmra.mxu3 %v2482_v46 }
 0x173   :  { %1117 = vmatpush.bf16.msrb.mxu0 %v1489_v21  ;;  %1130 = vmatpush.bf16.msrb.mxu1 %v1713_v22 }
 0x177   :  { %1118 = vmatpush.bf16.msrb.mxu0 %v1461_v27  ;;  %1131 = vmatpush.bf16.msrb.mxu1 %v1685_v28 }
 0x17b   :  { %1119 = vmatpush.bf16.msrb.mxu0 %v1433_v33  ;;  %1132 = vmatpush.bf16.msrb.mxu1 %v1657_v34 }
 0x17f   :  { %1120 = vmatpush.bf16.msrb.mxu0 %v1405_v39  ;;  %1133 = vmatpush.bf16.msrb.mxu1 %v1629_v0 }
 0x183   :  { %1121 = vmatpush.bf16.msrb.mxu0 %v1377_v43  ;;  %1134 = vmatpush.bf16.msrb.mxu1 %v1601_v44 }
 0x187   :  { %1122 = vmatpush.bf16.msrb.mxu0 %v1349_v51  ;;  %1135 = vmatpush.bf16.msrb.mxu1 %v1573_v52 }
 0x18b   :  { %1123 = vmatpush.bf16.msrb.mxu0 %v1321_v59  ;;  %1136 = vmatpush.bf16.msrb.mxu1 %v1545_v60 }
 0x18e   :  { %1124 = vmatmul.bf16.vlgmr.msrb.gmra.mxu0 %v2480_v45  ;;  %1137 = vmatmul.bf16.vlgmr.msrb.gmra.mxu1 %v2482_v46  ;;  %v368_v46 = vld [vmem:[%s2781_s6] sm:$0x7f]  ;;  %s1911_s6 = smov [#allocation2]  }
 0x18f   :  { %v371_v16 = vperm.slane %v368_v46, 1  ;;  %v373_v19 = vperm.slane %v368_v46, 3  ;;  %v372_v20 = vperm.slane %v368_v46, 2  ;;  %v375_v21 = vperm.slane %v368_v46, 5  ;;  %s1223_s15 = sshll.u32 %s1911_s6, 4  ;;  %s1224_s15 = int_to_ptr.vmem [resolvable:$true] %s1223_s15 }
 0x190   :  { %v370_v22 = vperm.slane %v368_v46, 0  ;;  %v374_v25 = vperm.slane %v368_v46, 4  ;;  %v376_v42 = vperm.slane %v368_v46, 6 }
 0x1ca   :  { %v969_v61 = vpop.f32.mrf.mxu0  ;;  %v982_v62 = vpop.f32.mrf.mxu1 }
 0x1cb   :  { %v970_v30 = vadd.f32 %v969_v61, %v370_v22 }
 0x1cd   :  { %v983_v36 = vadd.f32 %v982_v62, %v970_v30 }
 0x1cf   :  { %v1142_v40 = vmul.f32 0.5, %v983_v36 }
 0x1d1   :  { %v995_v53 = vpop.f32.mrf.mxu2  ;;  %v1008_v63 = vpop.f32.mrf.mxu3 }
 0x1d2   :  { %v971_v54 = vpop.f32.mrf.mxu0  ;;  %v984_v2 = vpop.f32.mrf.mxu1  ;;  %v996_v23 = vadd.f32 %v995_v53, %v371_v16 }
 0x1d4   :  { %v1009_v31 = vadd.f32 %v1008_v63, %v996_v23 }
 0x1d6   :  { %v1143_v37 = vmul.f32 0.5, %v1009_v31 }
 0x1d8   :  { %1871 = vtanh.f32 %v1143_v37 }
 0x1d9   :  { %v997_v3 = vpop.f32.mrf.mxu2  ;;  %v1010_v4 = vpop.f32.mrf.mxu3 }
 0x1da   :  { %v1021_v5 = vpop.f32.mrf.mxu0  ;;  %v1034_v6 = vpop.f32.mrf.mxu1 }
 0x1db   :  { %v1022_v26 = vadd.f32 %v1021_v5, %v372_v20 }
 0x1dd   :  { %v1035_v34 = vadd.f32 %v1034_v6, %v1022_v26 }
 0x1de   :  { %v1872_v43 = vpop.eup %1871 }
 0x1df   :  { %v1144_v0 = vmul.f32 0.5, %v1035_v34  ;;  %v1157_v59 = vmul.f32 0.5, %v1872_v43 }
 0x1e1   :  { %v1047_v7 = vpop.f32.mrf.mxu2  ;;  %v1060_v8 = vpop.f32.mrf.mxu3  ;;  %v1164_v3 = vadd.f32 0.5, %v1157_v59 }
 0x1e2   :  { %v1023_v9 = vpop.f32.mrf.mxu0  ;;  %v1036_v10 = vpop.f32.mrf.mxu1  ;;  %v1048_v24 = vadd.f32 %v1047_v7, %v373_v19 }
 0x1e4   :  { %v1061_v32 = vadd.f32 %v1060_v8, %v1048_v24 }
 0x1e6   :  { %v1145_v38 = vmul.f32 0.5, %v1061_v32 }
 0x1e8   :  { %1873 = vtanh.f32 %v1145_v38 }
 0x1e9   :  { %v1049_v11 = vpop.f32.mrf.mxu2  ;;  %v1062_v12 = vpop.f32.mrf.mxu3  ;;  %1875 = vtanh.f32 %v1144_v0 }
 0x1eb   :  { %v1073_v13 = vpop.f32.mrf.mxu0  ;;  %v1086_v45 = vpop.f32.mrf.mxu1 }
 0x1ec   :  { %v1074_v33 = vadd.f32 %v1073_v13, %v374_v25 }
 0x1ee   :  { %v1087_v39 = vadd.f32 %v1086_v45, %v1074_v33  ;;  %v1874_v48 = vpop.eup %1873 }
 0x1ef   :  { %v1876_v50 = vpop.eup %1875  ;;  %v1159_v56 = vmul.f32 0.5, %v1874_v48 }
 0x1f0   :  { %v1146_v41 = vmul.f32 0.5, %v1087_v39  ;;  %v1158_v60 = vmul.f32 0.5, %v1876_v50 }
 0x1f1   :  { %v1166_v53 = vadd.f32 0.5, %v1159_v56 }
 0x1f2   :  { %v1165_v4 = vadd.f32 0.5, %v1158_v60 }
 0x1f3   :  { %v1099_v14 = vpop.f32.mrf.mxu2  ;;  %v1112_v15 = vpop.f32.mrf.mxu3 }
 0x1f4   :  { %v1075_v17 = vpop.f32.mrf.mxu0  ;;  %v1088_v18 = vpop.f32.mrf.mxu1  ;;  %v1100_v27 = vadd.f32 %v1099_v14, %v375_v21  ;;  %v1171_v7 = vpack.c.bf16 %v1166_v53, %v1165_v4 }
 0x1f6   :  { %v1113_v35 = vadd.f32 %v1112_v15, %v1100_v27  ;;  %v1179_v13 = vrot.slane %v1171_v7, 6  ;;  %v1180_v45 = vrot.slane %v1171_v7, 1 }
 0x1f8   :  { %v1147_v1 = vmul.f32 0.5, %v1113_v35  ;;  %v1192_v20 = vsel %vm1189_vm12, %v1179_v13, %v1180_v45 }
 0x1fa   :  { %1877 = vtanh.f32 %v1147_v1 }
 0x1fb   :  { %v1101_v28 = vpop.f32.mrf.mxu2  ;;  %v1114_v29 = vpop.f32.mrf.mxu3  ;;  %1879 = vtanh.f32 %v1142_v40 }
 0x1fc   :  { %1881 = vtanh.f32 %v1146_v41 }
 0x200   :  { %v1878_v51 = vpop.eup %1877 }
 0x201   :  { %v1880_v55 = vpop.eup %1879  ;;  %v1161_v61 = vmul.f32 0.5, %v1878_v51 }
 0x202   :  { %v1882_v57 = vpop.eup %1881  ;;  %v1156_v62 = vmul.f32 0.5, %v1880_v55 }
 0x203   :  { %v1160_v63 = vmul.f32 0.5, %v1882_v57  ;;  %v1168_v5 = vadd.f32 0.5, %v1161_v61 }
 0x204   :  { %v1163_v6 = vadd.f32 0.5, %v1156_v62 }
 0x205   :  { %v1167_v8 = vadd.f32 0.5, %v1160_v63 }
 0x206   :  { %v1170_v10 = vpack.c.bf16 %v1164_v3, %v1163_v6 }
 0x207   :  { %v1172_v11 = vpack.c.bf16 %v1168_v5, %v1167_v8 }
 0x208   :  { %v1178_v14 = vrot.slane %v1170_v10, 3 }
 0x209   :  { %v1181_v15 = vrot.slane %v1172_v11, 4  ;;  %v1182_v16 = vrot.slane %v1172_v11, 7 }
 0x20a   :  { %v1188_v21 = vsel %vm1185_vm10, %v1170_v10, %v1178_v14 }
 0x20b   :  { %v1125_v44 = vpop.f32.mrf.mxu0  ;;  %v1138_v47 = vpop.f32.mrf.mxu1  ;;  %v1197_v22 = vsel %vm1194_vm0, %v1181_v15, %v1182_v16  ;;  %v1193_v24 = vsel %vm159_vm1, %v1188_v21, %v1192_v20 }
 0x20c   :  { %v1126_v49 = vadd.f32 %v1125_v44, %v376_v42 }
 0x20e   :  { %v1139_v52 = vadd.f32 %v1138_v47, %v1126_v49 }
 0x210   :  { %v1148_v58 = vmul.f32 0.5, %v1139_v52 }
 0x212   :  { %1883 = vtanh.f32 %v1148_v58 }
 0x213   :  { %v1127_v54 = vpop.f32.mrf.mxu0  ;;  %v1140_v2 = vpop.f32.mrf.mxu1 }
 0x218   :  { %v1884_v9 = vpop.eup %1883 }
 0x219   :  { %v1162_v12 = vmul.f32 0.5, %v1884_v9 }
 0x21b   :  { %v1169_v46 = vadd.f32 0.5, %v1162_v12 }
 0x21d   :  { %v1173_v17 = vpack.c.bf16 %v1169_v46, %v1169_v46 }
 0x21f   :  { %v1183_v18 = vrot.slane %v1173_v17, 2  ;;  %v1184_v19 = vrot.slane %v1173_v17, 5 }
 0x221   :  { %v1201_v23 = vsel %vm1198_vm4, %v1183_v18, %v1184_v19 }
 0x222   :  { %v1203_v25 = vsel %vm1202_vm7, %v1197_v22, %v1201_v23 }
 0x223   :  { %v1205_v26 = vsel %vm1204_vm8, %v1193_v24, %v1203_v25 }
 0x224   :  { %1217 = vst.msk [vmem:[#allocation2] sm:$0x7f] %vm1216_vm9, %v1205_v26 }
 0x225   :  { %1228 = dma.vmem_to_hbm [thread:$0]  %s1224_s15, 112, %s1226_s17, [#allocation3]  }
 0x226   :  { %1909 = dma.done.wait [#allocation3], 112  }
 0x227   :  { %1910 = vsyncadd [#allocation3], 4294967184 }
 0x228   :  { %1233 = vsyncpa [#allocation3], 1 }

</bundles_post_ra>
